<compile_context>
chip_gen: v7x
topology: tpu7x:2x2x1
jax: 0.10.0
libtpu: 0.0.40
codegen_flags: <defaults>
</compile_context>

<pallas_src>
from functools import partial

import jax
import jax.numpy as jnp
import numpy as np
from jax.experimental import pallas as pl
from jax.experimental.pallas import tpu as pltpu


def _cdiv(a, b):
    return -(-a // b)


def _round_up(a, b):
    return _cdiv(a, b) * b


# --------------------------------------------------------------------------
# pallas_call (kernels are closures over the static n / tn / kc)
# --------------------------------------------------------------------------
def _loss_call(pos_t, a_col, c_col, n, tn, kc, psi0_row=None):
    """pos_t: (D, n_pad) lane-dense positions (walkers on lanes).
    a_col:  (D, 1)  = -0.5*alpha              (psi exponent coefficient)
    c_col:  (D, 1)  =  0.5*(omega^2-alpha^2)  (eloc coefficient)
    n, tn, kc: Python scalars (true walker count, tile width, kinetic const).
    psi0_row: optional (1, n_pad) lane-dense psi0 (ratio-weight calls)."""
    d, n_pad = pos_t.shape
    steps = _cdiv(n_pad, tn)

    def tile_common(i, pos_ref, a_ref, c_ref):
        pos = pos_ref[...]                                          # (D, TN)
        p2 = pos * pos
        # psi exponent and full local energy, both lane-dense (1, TN).
        expo = jnp.sum(p2 * a_ref[...], axis=0, keepdims=True)
        eloc = jnp.sum(p2 * c_ref[...], axis=0, keepdims=True) + kc
        # validity mask: real walkers only (padded / out-of-bounds lanes off).
        lane = jax.lax.broadcasted_iota(jnp.int32, (1, tn), 1)
        valid = (i * tn + lane) < n
        return expo, eloc, valid

    def pack2(x0, x1):
        lane = jax.lax.broadcasted_iota(jnp.int32, (1, 1, 128), 2)
        return jnp.where(lane == 0, x0, jnp.where(lane == 1, x1, 0.0))

    def kernel_first(pos_ref, a_ref, c_ref, psi_ref, eloc_ref, part_ref):
        i = pl.program_id(0)
        expo, eloc, valid = tile_common(i, pos_ref, a_ref, c_ref)
        psi_ref[...] = jnp.exp(expo)
        eloc_ref[...] = eloc
        # first call: w = ones -> only sum(eloc) over real walkers is needed.
        s_we = jnp.sum(jnp.where(valid, eloc, 0.0))
        part_ref[...] = pack2(s_we, 0.0)

    def kernel_ratio(pos_ref, a_ref, c_ref, psi0_ref, eloc_ref, part_ref):
        i = pl.program_id(0)
        expo, eloc, valid = tile_common(i, pos_ref, a_ref, c_ref)
        eloc_ref[...] = eloc
        # later calls: w = (psi/psi0)^2, normalized by sum(w) in the wrapper.
        ratio = jnp.exp(expo) / psi0_ref[...]
        u = ratio * ratio
        s_we = jnp.sum(jnp.where(valid, u * eloc, 0.0))
        s_u = jnp.sum(jnp.where(valid, u, 0.0))
        part_ref[...] = pack2(s_we, s_u)

    pos_spec = pl.BlockSpec((d, tn), lambda i: (0, i))
    # NOTE(v5e): if profiling shows exposed DMA waits, use
    #   pl.BlockSpec((d, tn), lambda i: (0, i), pipeline_mode=pl.Buffered(3))
    col_spec = pl.BlockSpec((d, 1), lambda i: (0, 0))
    row_spec = pl.BlockSpec((1, tn), lambda i: (0, i))
    part_spec = pl.BlockSpec((1, 1, 128), lambda i: (i, 0, 0))

    row_shape = jax.ShapeDtypeStruct((1, n_pad), jnp.float32)
    part_shape = jax.ShapeDtypeStruct((steps, 1, 128), jnp.float32)
    cp = pltpu.CompilerParams(dimension_semantics=("parallel",))

    if psi0_row is None:
        return pl.pallas_call(
            kernel_first,
            out_shape=(row_shape, row_shape, part_shape),
            grid=(steps,),
            in_specs=[pos_spec, col_spec, col_spec],
            out_specs=(row_spec, row_spec, part_spec),
            compiler_params=cp,
        )(pos_t, a_col, c_col)

    return pl.pallas_call(
        kernel_ratio,
        out_shape=(row_shape, part_shape),
        grid=(steps,),
        in_specs=[pos_spec, col_spec, col_spec, row_spec],
        out_specs=(row_spec, part_spec),
        compiler_params=cp,
    )(pos_t, a_col, c_col, psi0_row)


# --------------------------------------------------------------------------
# jitted forward wrappers (fuse the single transpose+pad pass and the tiny
# scalar epilogue around the pallas_call)
# --------------------------------------------------------------------------
@partial(jax.jit, static_argnames=("n", "tn", "kc"))
def _forward_first(pos, a_col, c_col, *, n, tn, kc):
    n_pad = _round_up(n, 128)
    pos_t = jnp.pad(pos.T, ((0, 0), (0, n_pad - n)))        # one fused pass
    psi_row, eloc_row, parts = _loss_call(pos_t, a_col, c_col, n, tn, kc)
    tot = jnp.sum(parts, axis=0).reshape(-1)
    loss = tot[0] / n                                        # mean(eloc)
    eloc = eloc_row[0, :n].reshape(n, 1)
    return loss, eloc, psi_row


@partial(jax.jit, static_argnames=("n", "tn", "kc"))
def _forward_ratio(pos, psi0_row, a_col, c_col, *, n, tn, kc):
    n_pad = _round_up(n, 128)
    pos_t = jnp.pad(pos.T, ((0, 0), (0, n_pad - n)))
    eloc_row, parts = _loss_call(pos_t, a_col, c_col, n, tn, kc,
                                 psi0_row=psi0_row)
    tot = jnp.sum(parts, axis=0).reshape(-1)
    # w = u/sum(u) -> loss = sum(u*eloc) / (sum(u) * N)
    loss = tot[0] / (tot[1] * n)
    eloc = eloc_row[0, :n].reshape(n, 1)
    return loss, eloc


# --------------------------------------------------------------------------
# module wrapper (mirrors qmctorch Loss(wf, method='energy', clip=False))
# --------------------------------------------------------------------------
class PallasLoss:
    """Forward pass of Loss(wf, method='energy', clip=False) with a synthetic
    Gaussian trial wavefunction / harmonic Hamiltonian."""

    def __init__(self, alpha, omega2, tn_max=32768):
        alpha = np.asarray(alpha, np.float32).reshape(-1)
        omega2 = np.asarray(omega2, np.float32).reshape(-1)
        self.a_col = jnp.asarray((-0.5 * alpha).reshape(-1, 1))
        self.c_col = jnp.asarray((0.5 * (omega2 - alpha * alpha)).reshape(-1, 1))
        self.kin_const = float(0.5 * np.sum(alpha))    # folded into the kernel
        assert tn_max % 128 == 0
        self.tn_max = int(tn_max)
        self.psi0 = None            # weight['psi0'], lane-dense (1, n_pad)

    def __call__(self, pos):
        pos = jnp.asarray(pos, jnp.float32)
        n, _ = pos.shape
        # Big tiles for DMA efficiency, but keep >= ~4 grid steps so the v7x
        # megacore ("parallel" grid axis) has work for both TensorCores.
        tn = min(self.tn_max, max(128, _round_up(_cdiv(n, 4), 128)))

        if self.psi0 is None:
            loss, eloc, psi_row = _forward_first(
                pos, self.a_col, self.c_col, n=n, tn=tn, kc=self.kin_const)
            # .detach().clone() equivalent: keep the padded lane-dense row so
            # ratio calls reuse it directly (padding lanes hold psi=exp(0)=1).
            self.psi0 = psi_row
        else:
            assert self.psi0.shape[1] == _round_up(n, 128), "walker count changed"
            loss, eloc = _forward_ratio(
                pos, self.psi0, self.a_col, self.c_col,
                n=n, tn=tn, kc=self.kin_const)
        return loss, eloc


# --------------------------------------------------------------------------
# pure-JAX reference & test
# --------------------------------------------------------------------------
def _reference(pos, alpha, omega2, psi0):
    """Pure-JAX reference of the Loss forward (energy method, no clipping)."""
    p2 = pos * pos
    psi = jnp.exp(-0.5 * jnp.sum(p2 * alpha, axis=-1, keepdims=True))
    eloc = (0.5 * jnp.sum(alpha)
            - 0.5 * jnp.sum(alpha * alpha * p2, axis=-1, keepdims=True)
            + 0.5 * jnp.sum(omega2 * p2, axis=-1, keepdims=True))
    if psi0 is None:
        w = jnp.ones_like(psi)
    else:
        w = (psi / psi0) ** 2
        w = w / jnp.sum(w)
    return jnp.mean(w * eloc), eloc, psi


if __name__ == "__main__":
    D = 12  # 4 electrons x 3 coordinates

    # deterministic synthetic wavefunction parameters
    alpha = 0.5 + 0.1 * np.arange(D, dtype=np.float32) / D
    omega2 = np.ones((D,), np.float32)
    a2 = jnp.asarray(alpha).reshape(1, -1)
    o2 = jnp.asarray(omega2).reshape(1, -1)

    key = jax.random.PRNGKey(0)
    # (N, tn_max) configs:
    #   (16, 32768): single full tile, default tile cap, padded-lane masking
    #   (300, 128) : 3 tiles of 128, ragged zero-padded tail in the last tile
    #   (600, 256) : 3 tiles of 256, n_pad=640 -> last block partially OOB
    configs = [(16, 32768), (300, 128), (600, 256)]

    for idx, (N, tn_max) in enumerate(configs):
        k1, k2 = jax.random.split(jax.random.fold_in(key, idx))
        pos1 = jax.random.normal(k1, (N, D), jnp.float32)
        pos2 = pos1 + 0.1 * jax.random.normal(k2, (N, D), jnp.float32)

        loss_mod = PallasLoss(alpha, omega2, tn_max=tn_max)
        # First call: psi0 is None -> uniform weights (loss = mean(eloc)).
        l1, e1 = loss_mod(pos1)
        # Second call: ratio weights w = (psi/psi0)^2 / sum.
        l2, e2 = loss_mod(pos2)
        jax.block_until_ready((l1, e1, l2, e2))

        r1_l, r1_e, r1_psi = _reference(pos1, a2, o2, None)
        r2_l, r2_e, _ = _reference(pos2, a2, o2, r1_psi)
        np.testing.assert_allclose(np.asarray(l1), np.asarray(r1_l), rtol=1e-4, atol=1e-5)
        np.testing.assert_allclose(np.asarray(e1), np.asarray(r1_e), rtol=1e-4, atol=1e-5)
        np.testing.assert_allclose(np.asarray(l2), np.asarray(r2_l), rtol=1e-4, atol=1e-5)
        np.testing.assert_allclose(np.asarray(e2), np.asarray(r2_e), rtol=1e-4, atol=1e-5)

    print("KERNEL_OK")
</pallas_src>

<mosaic_0001>
module attributes {stable_mosaic.version = 11 : i64} {
  func.func @kernel_first(%arg0: i32, %arg1: memref<12x128xf32, #tpu.memory_space<vmem>>, %arg2: memref<12x1xf32, #tpu.memory_space<vmem>>, %arg3: memref<12x1xf32, #tpu.memory_space<vmem>>, %arg4: memref<1x128xf32, #tpu.memory_space<vmem>>, %arg5: memref<1x128xf32, #tpu.memory_space<vmem>>, %arg6: memref<1x1x128xf32, #tpu.memory_space<vmem>>) attributes {dimension_semantics = [#tpu.dimension_semantics<parallel>], iteration_bounds = array<i64: 1>, scalar_prefetch = 0 : i64, scratch_operands = 0 : i64, tpu.core_type = #tpu.core_type<tc>, window_params = [{transform_indices = @transform_0, window_bounds = array<i64: 12, 128>}, {pipeline_mode = #tpu.pipeline_mode<synchronous>, transform_indices = @transform_1, window_bounds = array<i64: 12, 1>}, {pipeline_mode = #tpu.pipeline_mode<synchronous>, transform_indices = @transform_2, window_bounds = array<i64: 12, 1>}, {transform_indices = @transform_3, window_bounds = array<i64: 1, 128>}, {transform_indices = @transform_4, window_bounds = array<i64: 1, 128>}, {transform_indices = @transform_5, window_bounds = array<i64: 1, 1, 128>}]} {
    %c0 = arith.constant 0 : index
    %c0_0 = arith.constant 0 : index
    %0 = vector.load %arg1[%c0, %c0_0] : memref<12x128xf32, #tpu.memory_space<vmem>>, vector<12x128xf32>
    %1 = arith.mulf %0, %0 : vector<12x128xf32>
    %c0_1 = arith.constant 0 : index
    %c0_2 = arith.constant 0 : index
    %2 = vector.load %arg2[%c0_1, %c0_2] : memref<12x1xf32, #tpu.memory_space<vmem>>, vector<12x1xf32>
    %3 = vector.broadcast %2 : vector<12x1xf32> to vector<12x128xf32>
    %4 = arith.mulf %1, %3 : vector<12x128xf32>
    %cst = arith.constant dense<0.000000e+00> : vector<128xf32>
    %5 = vector.multi_reduction <add>, %4, %cst [0] : vector<12x128xf32> to vector<128xf32>
    %6 = vector.shape_cast %5 : vector<128xf32> to vector<1x128xf32>
    %c0_3 = arith.constant 0 : index
    %c0_4 = arith.constant 0 : index
    %7 = vector.load %arg3[%c0_3, %c0_4] : memref<12x1xf32, #tpu.memory_space<vmem>>, vector<12x1xf32>
    %8 = vector.broadcast %7 : vector<12x1xf32> to vector<12x128xf32>
    %9 = arith.mulf %1, %8 : vector<12x128xf32>
    %cst_5 = arith.constant dense<0.000000e+00> : vector<128xf32>
    %10 = vector.multi_reduction <add>, %9, %cst_5 [0] : vector<12x128xf32> to vector<128xf32>
    %11 = vector.shape_cast %10 : vector<128xf32> to vector<1x128xf32>
    %cst_6 = arith.constant 3.275000e+00 : f32
    %12 = vector.broadcast %cst_6 : f32 to vector<1x128xf32>
    %13 = arith.addf %11, %12 : vector<1x128xf32>
    %14 = tpu.iota {dimensions = array<i32: 1>} : vector<1x128xi32>
    %c128_i32 = arith.constant 128 : i32
    %15 = arith.muli %arg0, %c128_i32 : i32
    %16 = vector.broadcast %15 : i32 to vector<1x128xi32>
    %17 = arith.addi %16, %14 : vector<1x128xi32>
    %c16_i32 = arith.constant 16 : i32
    %18 = vector.broadcast %c16_i32 : i32 to vector<1x128xi32>
    %19 = arith.cmpi slt, %17, %18 : vector<1x128xi32>
    %20 = math.exp %6 : vector<1x128xf32>
    %c0_7 = arith.constant 0 : index
    %c0_8 = arith.constant 0 : index
    %21 = vector.load %arg4[%c0_7, %c0_8] : memref<1x128xf32, #tpu.memory_space<vmem>>, vector<1x128xf32>
    tpu.vector_store %arg4[%c0_7, %c0_8], %20 {strides = array<i32>} : memref<1x128xf32, #tpu.memory_space<vmem>>, vector<1x128xf32>,
    %c0_9 = arith.constant 0 : index
    %c0_10 = arith.constant 0 : index
    %22 = vector.load %arg5[%c0_9, %c0_10] : memref<1x128xf32, #tpu.memory_space<vmem>>, vector<1x128xf32>
    tpu.vector_store %arg5[%c0_9, %c0_10], %13 {strides = array<i32>} : memref<1x128xf32, #tpu.memory_space<vmem>>, vector<1x128xf32>,
    %cst_11 = arith.constant 0.000000e+00 : f32
    %23 = vector.broadcast %cst_11 : f32 to vector<1x128xf32>
    %24 = arith.select %19, %13, %23 : vector<1x128xi1>, vector<1x128xf32>
    %25 = vector.shape_cast %24 : vector<1x128xf32> to vector<1x1x128xf32>
    %cst_12 = arith.constant dense<0.000000e+00> : vector<1xf32>
    %26 = vector.multi_reduction <add>, %25, %cst_12 [1, 2] : vector<1x1x128xf32> to vector<1xf32>
    %27 = vector.shape_cast %26 : vector<1xf32> to vector<1x1x1xf32>
    %28 = vector.extract %27[0, 0, 0] : f32 from vector<1x1x1xf32>
    %29 = tpu.iota {dimensions = array<i32: 2>} : vector<1x1x128xi32>
    %c0_i32 = arith.constant 0 : i32
    %30 = vector.broadcast %c0_i32 : i32 to vector<1x1x128xi32>
    %31 = arith.cmpi eq, %29, %30 : vector<1x1x128xi32>
    %c1_i32 = arith.constant 1 : i32
    %32 = vector.broadcast %c1_i32 : i32 to vector<1x1x128xi32>
    %33 = arith.cmpi eq, %29, %32 : vector<1x1x128xi32>
    %cst_13 = arith.constant 0.000000e+00 : f32
    %cst_14 = arith.constant 0.000000e+00 : f32
    %34 = vector.broadcast %cst_13 : f32 to vector<1x1x128xf32>
    %35 = vector.broadcast %cst_14 : f32 to vector<1x1x128xf32>
    %36 = arith.select %33, %34, %35 : vector<1x1x128xi1>, vector<1x1x128xf32>
    %37 = vector.broadcast %28 : f32 to vector<1x1x128xf32>
    %38 = arith.select %31, %37, %36 : vector<1x1x128xi1>, vector<1x1x128xf32>
    %c0_15 = arith.constant 0 : index
    %c0_16 = arith.constant 0 : index
    %c0_17 = arith.constant 0 : index
    %39 = vector.load %arg6[%c0_15, %c0_16, %c0_17] : memref<1x1x128xf32, #tpu.memory_space<vmem>>, vector<1x1x128xf32>
    tpu.vector_store %arg6[%c0_15, %c0_16, %c0_17], %38 {strides = array<i32>} : memref<1x1x128xf32, #tpu.memory_space<vmem>>, vector<1x1x128xf32>,
    return
  }
  func.func @transform_0(%arg0: i32) -> (i32, i32) {
    %c0_i32 = arith.constant 0 : i32
    %c0_i32_0 = arith.constant 0 : i32
    return %c0_i32, %arg0 : i32, i32
  }
  func.func @transform_1(%arg0: i32) -> (i32, i32) {
    %c0_i32 = arith.constant 0 : i32
    %c0_i32_0 = arith.constant 0 : i32
    %c0_i32_1 = arith.constant 0 : i32
    return %c0_i32, %c0_i32_0 : i32, i32
  }
  func.func @transform_2(%arg0: i32) -> (i32, i32) {
    %c0_i32 = arith.constant 0 : i32
    %c0_i32_0 = arith.constant 0 : i32
    %c0_i32_1 = arith.constant 0 : i32
    return %c0_i32, %c0_i32_0 : i32, i32
  }
  func.func @transform_3(%arg0: i32) -> (i32, i32) {
    %c0_i32 = arith.constant 0 : i32
    %c0_i32_0 = arith.constant 0 : i32
    return %c0_i32, %arg0 : i32, i32
  }
  func.func @transform_4(%arg0: i32) -> (i32, i32) {
    %c0_i32 = arith.constant 0 : i32
    %c0_i32_0 = arith.constant 0 : i32
    return %c0_i32, %arg0 : i32, i32
  }
  func.func @transform_5(%arg0: i32) -> (i32, i32, i32) {
    %c0_i32 = arith.constant 0 : i32
    %c0_i32_0 = arith.constant 0 : i32
    %c0_i32_1 = arith.constant 0 : i32
    return %arg0, %c0_i32, %c0_i32_0 : i32, i32, i32
  }
}

</mosaic_0001>

<bundles_post_ra>
// kernel: _forward_first.1
= control target key start
LH: loop header
LB: loop body
LE: loop exit
PB: predicated region body
PF: predicated region fallthrough
CT: control target
= control target key end

     0   :  { %v148_v1 = vmov 0   ;;  %s218_s0 = inlined_call_operand.vmem [shape: f32[12,128], index: 0, kind: input, shape index: {}]   ;;  %s219_s1 = inlined_call_operand.vmem [shape: f32[12,1], index: 1, kind: input, shape index: {}]   ;;  %s220_s2 = inlined_call_operand.vmem [shape: f32[12,1], index: 2, kind: input, shape index: {}]   ;;  %s221_s3 = inlined_call_operand.hbm [shape: f32[1,128], index: 3, kind: output, shape index: {0}]   ;;  %s222_s4 = inlined_call_operand.vmem [shape: f32[1,128], index: 4, kind: output, shape index: {1}]   ;;  %s223_s5 = inlined_call_operand.vmem [shape: f32[1,1,128], index: 5, kind: output, shape index: {2}]  }
   0x1   :  { %v46_v0 = vld [vmem:[%s220_s2 + $0x8] sm:$0xf]  ;;  %120 = vset.pattern.permute.xlu0 %v148_v1  ;;  %121 = vset.pattern.permute.xlu1 %v148_v1 }
   0x2   :  { %11 = vsyncpa [#allocation3], 0  ;;  %54 = vperm.xlu0 %120, %v46_v0   ;;  %v45_v2 = vld [vmem:[%s220_s2] sm:$0xff]  ;;  %v19_v4 = vld [vmem:[%s218_s0 + $0x8] sm:$0xf]  ;;  %vm36_vm0 = vcmask 1043456   ;;  %v68_v16 = vlaneseq }
   0x3   :  { %v22_v3 = vld [vmem:[%s219_s1] sm:$0xff]  ;;  %v21_v5 = vmul.f32 %v19_v4, %v19_v4  ;;  %vm79_vm2 = vcmask 1040384   ;;  %v23_v25 = vld [vmem:[%s219_s1 + $0x8] sm:$0xf]  ;;  %s149_s1 = smov [#allocation2]  }
   0x4   :  { %v18_v6 = vld [vmem:[%s218_s0] sm:$0xff]  ;;  %v69_v19 = vand.u32 127, %v68_v16 }
   0x5   :  { %v20_v8 = vmul.f32 %v18_v6, %v18_v6 }
   0x6   :  { %49 = vperm.xlu0 %120, %v45_v2   ;;  %vm73_vm1 = vcmp.lt.s32.totalorder %v69_v19, 16 }
   0xa   :  { %26 = vperm.xlu0 %120, %v22_v3  }
  0x81   :  { %v55_v7 = vpop.permute.xlu0 %54 }
  0x82   :  { %v58_v9 = vmul.f32 %v55_v7, %v21_v5 }
  0x84   :  { %v59_v12 = vsel %vm36_vm0, %v58_v9, 0.0 }
  0x85   :  { %v50_v10 = vpop.permute.xlu0 %49 }
  0x86   :  { %v57_v11 = vmul.f32 %v50_v10, %v20_v8 }
  0x88   :  { %v60_v13 = vadd.f32 %v59_v12, %v57_v11 }
  0x89   :  { %v27_v28 = vpop.permute.xlu0 %26 }
  0x8a   :  { %v61_v14 = vrot.slane %v60_v13, 4  ;;  %v34_v33 = vmul.f32 %v27_v28, %v20_v8 }
  0x8c   :  { %v62_v15 = vadd.f32 %v61_v14, %v60_v13 }
  0x8e   :  { %v63_v17 = vrot.slane %v62_v15, 2 }
  0x90   :  { %v64_v18 = vadd.f32 %v63_v17, %v62_v15 }
  0x92   :  { %v65_v20 = vrot.slane %v64_v18, 1 }
  0x94   :  { %v66_v21 = vadd.f32 %v65_v20, %v64_v18 }
  0x96   :  { %v67_v22 = vadd.f32 3.275, %v66_v21 }
  0x98   :  { %v78_v23 = vsel %vm73_vm1, %v67_v22, 0.0  ;;  %77 = vst [vmem:[%s222_s4] sm:$0x1] %v67_v22  ;;  %s100_s4 = sshll.u32 %s149_s1, 4  ;;  %s101_s4 = int_to_ptr.vmem [resolvable:$true] %s100_s4 }
  0x99   :  { %v80_v24 = vsel %vm79_vm2, %v78_v23, 0.0  ;;  %s124_s30 = scalar_lea.vmem %s101_s4, 16  ;;  %s128_s6 = scalar_lea.vmem %s101_s4, 32 }
  0x9a   :  { %81 = vadd.xlane.f32.xlu1 %v80_v24  ;;  %p125_p0 = scmp.ne.s32.totalorder %s101_s4, %s124_s30  ;;  %p129_p1 = scmp.lt.s32.totalorder %s101_s4, %s101_s4 }
  0x9b   :  { %p130_p2 = scmp.lt.s32.totalorder %s128_s6, %s124_s30 }
  0x9d   :  { %p131_p3 = por %p130_p2, %p129_p1 }
  0x9f   :  { %p132_p4 = pnand %p131_p3, %p125_p0 }
  0xab   :  { %31 = vperm.xlu1 %121, %v23_v25  }
 0x127   :  { %v82_v26 = vpop.xlane.xlu1 %81 }
 0x128   :  { %v83_v27 = vrot.slane %v82_v26, 4 }
 0x12a   :  { %v84_v29 = vadd.f32 %v83_v27, %v82_v26 }
 0x12b   :  { %v32_v30 = vpop.permute.xlu1 %31 }
 0x12c   :  { %v85_v31 = vrot.slane %v84_v29, 2  ;;  %v35_v32 = vmul.f32 %v32_v30, %v21_v5 }
 0x12e   :  { %v37_v34 = vsel %vm36_vm0, %v35_v32, 0.0  ;;  %v86_v35 = vadd.f32 %v85_v31, %v84_v29 }
 0x12f   :  { %v38_v36 = vadd.f32 %v37_v34, %v34_v33 }
 0x130   :  { %v87_v37 = vrot.slane %v86_v35, 1 }
 0x131   :  { %v39_v38 = vrot.slane %v38_v36, 4 }
 0x132   :  { %v88_v39 = vadd.f32 %v87_v37, %v86_v35 }
 0x133   :  { %v40_v40 = vadd.f32 %v39_v38, %v38_v36 }
 0x134   :  { %116 = vpush %v88_v39 }
 0x135   :  { %v41_v41 = vrot.slane %v40_v40, 2 }
 0x137   :  { %v42_v42 = vadd.f32 %v41_v41, %v40_v40 }
 0x139   :  { %v43_v43 = vrot.slane %v42_v42, 1 }
 0x13b   :  { %v44_v44 = vadd.f32 %v43_v43, %v42_v42 }
 0x13d   :  { %v74_v45 = vmul.f32 1.442695, %v44_v44 }
 0x13f   :  { %122 = vpow2.f32 %v74_v45 }
 0x149   :  { %v123_v46 = vpop.eup %122 }
 0x14a   :  { %76 = vst [vmem:[#allocation2] sm:$0x1] %v123_v46 }
 0x14b   :  { %135 = shalt.err (!%p132_p4)
}
 0x14c   :  { %s136_s9 = scalar_lea.hbm %s221_s3, 16 }
 0x14d   :  { %p137_p5 = scmp.ne.s32.totalorder %s221_s3, %s136_s9  ;;  %p140_p6 = scmp.lt.u32.totalorder %s136_s9, %s221_s3 }
 0x14f   :  { %p142_p7 = pnand %p140_p6, %p137_p5 }
 0x151   :  { %145 = shalt.err (!%p142_p7)
}
 0x152   :  { %103 = dma.vmem_to_hbm [thread:$0]  %s101_s4, 16, %s221_s3, [#allocation3]   ;;  %vm90_vm3 = vcmp.eq.s32.totalorder %v69_v19, 0 }
 0x165   :  { %s117_s16 = spop %116 }
 0x166   :  { %v91_v47 = vstv %s117_s16 }
 0x167   :  { %v92_v48 = vsel %vm90_vm3, %v91_v47, 0.0 }
 0x168   :  { %93 = vst [vmem:[%s223_s5] sm:$0x1] %v92_v48 }
 0x169   :  { %146 = dma.done.wait [#allocation3], 16  }
 0x16a   :  { %147 = vsyncadd [#allocation3], 4294967280 }
 0x16b   :  { %115 = vsyncpa [#allocation3], 1 }

</bundles_post_ra>
